<compile_context>
chip_gen: v5e
topology: v5e:2x2
jax: 0.10.0
libtpu: 0.0.40
codegen_flags: <defaults>
</compile_context>

<pallas_src>
import functools
import math

import jax
import jax.numpy as jnp
from jax.experimental import pallas as pl
from jax.experimental.pallas import tpu as pltpu


# ---------------------------------------------------------------------------
# Kernel: single invocation over the flattened (B*S, E) problem.
#   QKV = X @ W_qkv + b_qkv                (one lane-dense matmul, N = 3*H*D)
#   per head h (batched over B):
#       S_h = Q_h K_h^T ; P_h = softmax(S_h) ; O_h = P_h V_h
#       Y  += O_h @ W_o[h*D:(h+1)*D, :]    (head-accumulated output projection)
#   out = LayerNorm(Y + b_o)               (eps = 1e-5, affine)
# ---------------------------------------------------------------------------
def _fused_mha_kernel(x_ref, wqkv_ref, bqkv_ref, wo_ref, bo_ref, g_ref, beta_ref,
                      y_ref, *, num_heads, d_head, batch, seq_len, emb):
    HD = num_heads * d_head
    x = x_ref[...]                                                   # (B*S, E) f32

    # Single stacked QKV projection (scale already folded into the Q columns).
    qkv = jnp.dot(x, wqkv_ref[...], preferred_element_type=jnp.float32) + bqkv_ref[...]
    # Split only the leading (sublane) axis -> layout-preserving reshape.
    qkv_b = qkv.reshape(batch, seq_len, 3 * HD)                      # (B, S, 3*H*D)

    # Accumulate the output projection head by head (no concat, no per-head slab).
    y = jnp.zeros((batch * seq_len, emb), jnp.float32)
    for h in range(num_heads):                                       # static unroll, H small
        c0 = h * d_head
        q_h = qkv_b[:, :, c0:c0 + d_head]                            # (B, S, D)
        k_h = qkv_b[:, :, HD + c0:HD + c0 + d_head]
        v_h = qkv_b[:, :, 2 * HD + c0:2 * HD + c0 + d_head]

        s = jnp.einsum('bqd,bkd->bqk', q_h, k_h,
                       preferred_element_type=jnp.float32)           # (B, S, S)
        s = s - jnp.max(s, axis=-1, keepdims=True)
        e = jnp.exp(s)
        p = e * (1.0 / jnp.sum(e, axis=-1, keepdims=True))
        # torch.nan_to_num(...) is a no-op here (no mask, denominator >= 1) -> dropped.
        o_h = jnp.einsum('bqk,bkd->bqd', p, v_h,
                         preferred_element_type=jnp.float32)         # (B, S, D)
        o_h2 = o_h.reshape(batch * seq_len, d_head)                  # merge leading dims only
        # Static, sublane-aligned row slice of the W_o ref (h*D multiples of 8).
        y = y + jnp.dot(o_h2, wo_ref[c0:c0 + d_head, :],
                        preferred_element_type=jnp.float32)          # (B*S, E)

    y = y + bo_ref[...]

    # LayerNorm, two-pass centered variance (biased), eps = 1e-5, affine.
    mean = jnp.mean(y, axis=-1, keepdims=True)
    yc = y - mean
    var = jnp.mean(yc * yc, axis=-1, keepdims=True)
    y_n = yc * jax.lax.rsqrt(var + 1e-5)
    y_ref[...] = (y_n * g_ref[...] + beta_ref[...]).astype(y_ref.dtype)


def multi_head_attention_fused(x, w_qkv, b_qkv, wo, bo, gamma, beta, *,
                               num_heads, d_head):
    """x: (B, S, E); w_qkv: (E, 3*H*D) with 1/sqrt(D) folded into the Q columns;
    b_qkv: (1, 3*H*D); wo: (H*D, E); bo/gamma/beta: (1, E)  ->  (B, S, E)."""
    B, S, E = x.shape
    HD = num_heads * d_head
    BS = B * S
    x2d = x.reshape(BS, E)                       # row-major contiguous -> free

    kernel = functools.partial(_fused_mha_kernel, num_heads=num_heads, d_head=d_head,
                               batch=B, seq_len=S, emb=E)
    vec_spec = pl.BlockSpec((1, E), lambda i: (0, 0))

    y2d = pl.pallas_call(
        kernel,
        out_shape=jax.ShapeDtypeStruct((BS, E), x.dtype),
        grid_spec=pltpu.PrefetchScalarGridSpec(
            num_scalar_prefetch=0,
            grid=(1,),                                               # single step: all B rows
            in_specs=[
                pl.BlockSpec((BS, E), lambda i: (0, 0)),             # X (flattened batch)
                pl.BlockSpec((E, 3 * HD), lambda i: (0, 0)),         # W_qkv (stacked, scaled)
                pl.BlockSpec((1, 3 * HD), lambda i: (0, 0)),         # b_qkv (stacked, scaled)
                pl.BlockSpec((HD, E), lambda i: (0, 0)),             # W_o
                vec_spec, vec_spec, vec_spec,                        # b_o, gamma, beta
            ],
            out_specs=pl.BlockSpec((BS, E), lambda i: (0, 0)),
        ),
    )(x2d, w_qkv, b_qkv, wo, bo, gamma, beta)
    return y2d.reshape(B, S, E)                  # row-major contiguous -> free


# ---------------------------------------------------------------------------
# One-time parameter prep (hoisted out of the per-call path): stack per-head
# weights into the lane-dense fused layout and fold 1/sqrt(d_head) into Q.
# ---------------------------------------------------------------------------
def prepare_fused_params(params):
    H, E, D = params["wq"].shape
    scale = 1.0 / math.sqrt(max(D, 1))

    def flat_w(w):   # (H, E, D) -> (E, H*D), column block h*D:(h+1)*D == w[h]
        return jnp.transpose(w, (1, 0, 2)).reshape(E, H * D)

    def flat_b(b):   # (H, 1, D) -> (1, H*D)
        return b.reshape(H * D)[None, :]

    w_qkv = jnp.concatenate(
        [flat_w(params["wq"]) * scale, flat_w(params["wk"]), flat_w(params["wv"])], axis=1)
    b_qkv = jnp.concatenate(
        [flat_b(params["bq"]) * scale, flat_b(params["bk"]), flat_b(params["bv"])], axis=1)
    return (w_qkv, b_qkv, params["wo"], params["bo"], params["gamma"], params["beta"])


# ---------------------------------------------------------------------------
# Pure-JAX reference for verification (mirrors the torch module semantics).
# ---------------------------------------------------------------------------
def reference(x, params):
    H = params["wq"].shape[0]
    D = params["wq"].shape[2]
    outs = []
    for h in range(H):
        q = x @ params["wq"][h] + params["bq"][h, 0]
        k = x @ params["wk"][h] + params["bk"][h, 0]
        v = x @ params["wv"][h] + params["bv"][h, 0]
        a = (q @ jnp.swapaxes(k, -2, -1)) / math.sqrt(max(D, 1))
        a = a - jnp.max(a, axis=-1, keepdims=True)
        p = jax.nn.softmax(a, axis=-1)
        p = jnp.nan_to_num(p, nan=0.0, posinf=1.0, neginf=0.0)
        outs.append(p @ v)
    oc = jnp.concatenate(outs, axis=-1)
    y = oc @ params["wo"] + params["bo"][0]
    mean = jnp.mean(y, axis=-1, keepdims=True)
    var = jnp.mean((y - mean) ** 2, axis=-1, keepdims=True)
    return (y - mean) / jnp.sqrt(var + 1e-5) * params["gamma"][0] + params["beta"][0]


def init_params(key, h, d_head, embedding_dim):
    ks = jax.random.split(key, 8)
    scale_in = 1.0 / math.sqrt(embedding_dim)
    scale_hd = 1.0 / math.sqrt(h * d_head)
    return {
        "wq": jax.random.normal(ks[0], (h, embedding_dim, d_head), jnp.float32) * scale_in,
        "bq": jax.random.normal(ks[1], (h, 1, d_head), jnp.float32) * scale_in,
        "wk": jax.random.normal(ks[2], (h, embedding_dim, d_head), jnp.float32) * scale_in,
        "bk": jax.random.normal(ks[3], (h, 1, d_head), jnp.float32) * scale_in,
        "wv": jax.random.normal(ks[4], (h, embedding_dim, d_head), jnp.float32) * scale_in,
        "bv": jax.random.normal(ks[5], (h, 1, d_head), jnp.float32) * scale_in,
        "wo": jax.random.normal(ks[6], (h * d_head, embedding_dim), jnp.float32) * scale_hd,
        "bo": jax.random.normal(ks[7], (1, embedding_dim), jnp.float32) * scale_hd,
        "gamma": jnp.ones((1, embedding_dim), jnp.float32),
        "beta": jnp.zeros((1, embedding_dim), jnp.float32),
    }


if __name__ == "__main__":
    B, S, E = 2, 8, 32       # batch, seq_len, embedding_dim
    H, D = 4, 8              # heads, d_head

    key = jax.random.PRNGKey(0)
    k_x, k_p = jax.random.split(key)
    x = jax.random.normal(k_x, (B, S, E), jnp.float32)
    params = init_params(k_p, H, D, E)

    # Parameter prep runs ONCE at init (hoisted out of the forward path, per review).
    fused = prepare_fused_params(params)
    fused = jax.tree_util.tree_map(jax.block_until_ready, fused)

    out = multi_head_attention_fused(x, *fused, num_heads=H, d_head=D)
    out = jax.block_until_ready(out)

    ref = reference(x, params)
    assert out.shape == (B, S, E)
    assert jnp.allclose(out, ref, atol=1e-4, rtol=1e-4), \
        f"max err {jnp.max(jnp.abs(out - ref))}"
    print("KERNEL_OK")
</pallas_src>

<mosaic_0001>
module attributes {stable_mosaic.version = 11 : i64} {
  func.func @_fused_mha_kernel(%arg0: i32, %arg1: memref<16x32xf32, #tpu.memory_space<vmem>>, %arg2: memref<32x96xf32, #tpu.memory_space<vmem>>, %arg3: memref<1x96xf32, #tpu.memory_space<vmem>>, %arg4: memref<32x32xf32, #tpu.memory_space<vmem>>, %arg5: memref<1x32xf32, #tpu.memory_space<vmem>>, %arg6: memref<1x32xf32, #tpu.memory_space<vmem>>, %arg7: memref<1x32xf32, #tpu.memory_space<vmem>>, %arg8: memref<16x32xf32, #tpu.memory_space<vmem>>) attributes {dimension_semantics = [#tpu.dimension_semantics<arbitrary>], iteration_bounds = array<i64: 1>, scalar_prefetch = 0 : i64, scratch_operands = 0 : i64, tpu.core_type = #tpu.core_type<tc>, window_params = [{pipeline_mode = #tpu.pipeline_mode<synchronous>, transform_indices = @transform_0, window_bounds = array<i64: 16, 32>}, {pipeline_mode = #tpu.pipeline_mode<synchronous>, transform_indices = @transform_1, window_bounds = array<i64: 32, 96>}, {pipeline_mode = #tpu.pipeline_mode<synchronous>, transform_indices = @transform_2, window_bounds = array<i64: 1, 96>}, {pipeline_mode = #tpu.pipeline_mode<synchronous>, transform_indices = @transform_3, window_bounds = array<i64: 32, 32>}, {pipeline_mode = #tpu.pipeline_mode<synchronous>, transform_indices = @transform_4, window_bounds = array<i64: 1, 32>}, {pipeline_mode = #tpu.pipeline_mode<synchronous>, transform_indices = @transform_5, window_bounds = array<i64: 1, 32>}, {pipeline_mode = #tpu.pipeline_mode<synchronous>, transform_indices = @transform_6, window_bounds = array<i64: 1, 32>}, {pipeline_mode = #tpu.pipeline_mode<synchronous>, transform_indices = @transform_7, window_bounds = array<i64: 16, 32>}]} {
    %c0 = arith.constant 0 : index
    %c0_0 = arith.constant 0 : index
    %0 = vector.load %arg1[%c0, %c0_0] : memref<16x32xf32, #tpu.memory_space<vmem>>, vector<16x32xf32>
    %c0_1 = arith.constant 0 : index
    %c0_2 = arith.constant 0 : index
    %1 = vector.load %arg2[%c0_1, %c0_2] : memref<32x96xf32, #tpu.memory_space<vmem>>, vector<32x96xf32>
    %cst = arith.constant dense<0.000000e+00> : vector<16x96xf32>
    %2 = tpu.matmul %0, %1, %cst {dimension_numbers = #tpu.dot_dimension_numbers<[1], [0], [0], [1], [0, 0, 1, 1], [], []>} : vector<16x32xf32>, vector<32x96xf32>, vector<16x96xf32> -> vector<16x96xf32>
    %c0_3 = arith.constant 0 : index
    %c0_4 = arith.constant 0 : index
    %3 = vector.load %arg3[%c0_3, %c0_4] : memref<1x96xf32, #tpu.memory_space<vmem>>, vector<1x96xf32>
    %4 = vector.broadcast %3 : vector<1x96xf32> to vector<16x96xf32>
    %5 = arith.addf %2, %4 : vector<16x96xf32>
    %6 = vector.shape_cast %5 : vector<16x96xf32> to vector<2x8x96xf32>
    %cst_5 = arith.constant 0.000000e+00 : f32
    %7 = vector.broadcast %cst_5 : f32 to vector<16x32xf32>
    %8 = vector.extract_strided_slice %6 {offsets = [0, 0, 0], sizes = [2, 8, 8], strides = [1, 1, 1]} : vector<2x8x96xf32> to vector<2x8x8xf32>
    %9 = vector.extract_strided_slice %6 {offsets = [0, 0, 32], sizes = [2, 8, 8], strides = [1, 1, 1]} : vector<2x8x96xf32> to vector<2x8x8xf32>
    %10 = vector.extract_strided_slice %6 {offsets = [0, 0, 64], sizes = [2, 8, 8], strides = [1, 1, 1]} : vector<2x8x96xf32> to vector<2x8x8xf32>
    "tpu.trace_start"() <{level = 10 : i32, message = "bqd,bkd->bqk"}> : () -> ()
    %cst_6 = arith.constant dense<0.000000e+00> : vector<2x8x8xf32>
    %11 = tpu.matmul %8, %9, %cst_6 {dimension_numbers = #tpu.dot_dimension_numbers<[2], [2], [1], [1], [0, 0, 0, 1, 1, 1], [0], [0]>} : vector<2x8x8xf32>, vector<2x8x8xf32>, vector<2x8x8xf32> -> vector<2x8x8xf32>
    "tpu.trace_stop"() : () -> ()
    %cst_7 = arith.constant dense<0xFF800000> : vector<2x8xf32>
    %12 = vector.multi_reduction <maximumf>, %11, %cst_7 [2] : vector<2x8x8xf32> to vector<2x8xf32>
    %13 = vector.shape_cast %12 : vector<2x8xf32> to vector<2x8x1xf32>
    %14 = vector.broadcast %13 : vector<2x8x1xf32> to vector<2x8x8xf32>
    %15 = arith.subf %11, %14 : vector<2x8x8xf32>
    %16 = math.exp %15 : vector<2x8x8xf32>
    %cst_8 = arith.constant dense<0.000000e+00> : vector<2x8xf32>
    %17 = vector.multi_reduction <add>, %16, %cst_8 [2] : vector<2x8x8xf32> to vector<2x8xf32>
    %18 = vector.shape_cast %17 : vector<2x8xf32> to vector<2x8x1xf32>
    %cst_9 = arith.constant 1.000000e+00 : f32
    %19 = vector.broadcast %cst_9 : f32 to vector<2x8x1xf32>
    %20 = arith.divf %19, %18 : vector<2x8x1xf32>
    %21 = vector.broadcast %20 : vector<2x8x1xf32> to vector<2x8x8xf32>
    %22 = arith.mulf %16, %21 : vector<2x8x8xf32>
    "tpu.trace_start"() <{level = 10 : i32, message = "bqk,bkd->bqd"}> : () -> ()
    %cst_10 = arith.constant dense<0.000000e+00> : vector<2x8x8xf32>
    %23 = tpu.matmul %22, %10, %cst_10 {dimension_numbers = #tpu.dot_dimension_numbers<[2], [1], [1], [2], [0, 0, 0, 1, 1, 2], [0], [0]>} : vector<2x8x8xf32>, vector<2x8x8xf32>, vector<2x8x8xf32> -> vector<2x8x8xf32>
    "tpu.trace_stop"() : () -> ()
    %24 = vector.shape_cast %23 : vector<2x8x8xf32> to vector<16x8xf32>
    %c0_11 = arith.constant 0 : index
    %c0_12 = arith.constant 0 : index
    %25 = vector.load %arg4[%c0_11, %c0_12] : memref<32x32xf32, #tpu.memory_space<vmem>>, vector<8x32xf32>
    %cst_13 = arith.constant dense<0.000000e+00> : vector<16x32xf32>
    %26 = tpu.matmul %24, %25, %cst_13 {dimension_numbers = #tpu.dot_dimension_numbers<[1], [0], [0], [1], [0, 0, 1, 1], [], []>} : vector<16x8xf32>, vector<8x32xf32>, vector<16x32xf32> -> vector<16x32xf32>
    %27 = arith.addf %7, %26 : vector<16x32xf32>
    %28 = vector.extract_strided_slice %6 {offsets = [0, 0, 8], sizes = [2, 8, 8], strides = [1, 1, 1]} : vector<2x8x96xf32> to vector<2x8x8xf32>
    %29 = vector.extract_strided_slice %6 {offsets = [0, 0, 40], sizes = [2, 8, 8], strides = [1, 1, 1]} : vector<2x8x96xf32> to vector<2x8x8xf32>
    %30 = vector.extract_strided_slice %6 {offsets = [0, 0, 72], sizes = [2, 8, 8], strides = [1, 1, 1]} : vector<2x8x96xf32> to vector<2x8x8xf32>
    "tpu.trace_start"() <{level = 10 : i32, message = "bqd,bkd->bqk"}> : () -> ()
    %cst_14 = arith.constant dense<0.000000e+00> : vector<2x8x8xf32>
    %31 = tpu.matmul %28, %29, %cst_14 {dimension_numbers = #tpu.dot_dimension_numbers<[2], [2], [1], [1], [0, 0, 0, 1, 1, 1], [0], [0]>} : vector<2x8x8xf32>, vector<2x8x8xf32>, vector<2x8x8xf32> -> vector<2x8x8xf32>
    "tpu.trace_stop"() : () -> ()
    %cst_15 = arith.constant dense<0xFF800000> : vector<2x8xf32>
    %32 = vector.multi_reduction <maximumf>, %31, %cst_15 [2] : vector<2x8x8xf32> to vector<2x8xf32>
    %33 = vector.shape_cast %32 : vector<2x8xf32> to vector<2x8x1xf32>
    %34 = vector.broadcast %33 : vector<2x8x1xf32> to vector<2x8x8xf32>
    %35 = arith.subf %31, %34 : vector<2x8x8xf32>
    %36 = math.exp %35 : vector<2x8x8xf32>
    %cst_16 = arith.constant dense<0.000000e+00> : vector<2x8xf32>
    %37 = vector.multi_reduction <add>, %36, %cst_16 [2] : vector<2x8x8xf32> to vector<2x8xf32>
    %38 = vector.shape_cast %37 : vector<2x8xf32> to vector<2x8x1xf32>
    %cst_17 = arith.constant 1.000000e+00 : f32
    %39 = vector.broadcast %cst_17 : f32 to vector<2x8x1xf32>
    %40 = arith.divf %39, %38 : vector<2x8x1xf32>
    %41 = vector.broadcast %40 : vector<2x8x1xf32> to vector<2x8x8xf32>
    %42 = arith.mulf %36, %41 : vector<2x8x8xf32>
    "tpu.trace_start"() <{level = 10 : i32, message = "bqk,bkd->bqd"}> : () -> ()
    %cst_18 = arith.constant dense<0.000000e+00> : vector<2x8x8xf32>
    %43 = tpu.matmul %42, %30, %cst_18 {dimension_numbers = #tpu.dot_dimension_numbers<[2], [1], [1], [2], [0, 0, 0, 1, 1, 2], [0], [0]>} : vector<2x8x8xf32>, vector<2x8x8xf32>, vector<2x8x8xf32> -> vector<2x8x8xf32>
    "tpu.trace_stop"() : () -> ()
    %44 = vector.shape_cast %43 : vector<2x8x8xf32> to vector<16x8xf32>
    %c8 = arith.constant 8 : index
    %c0_19 = arith.constant 0 : index
    %45 = vector.load %arg4[%c8, %c0_19] : memref<32x32xf32, #tpu.memory_space<vmem>>, vector<8x32xf32>
    %cst_20 = arith.constant dense<0.000000e+00> : vector<16x32xf32>
    %46 = tpu.matmul %44, %45, %cst_20 {dimension_numbers = #tpu.dot_dimension_numbers<[1], [0], [0], [1], [0, 0, 1, 1], [], []>} : vector<16x8xf32>, vector<8x32xf32>, vector<16x32xf32> -> vector<16x32xf32>
    %47 = arith.addf %27, %46 : vector<16x32xf32>
    %48 = vector.extract_strided_slice %6 {offsets = [0, 0, 16], sizes = [2, 8, 8], strides = [1, 1, 1]} : vector<2x8x96xf32> to vector<2x8x8xf32>
    %49 = vector.extract_strided_slice %6 {offsets = [0, 0, 48], sizes = [2, 8, 8], strides = [1, 1, 1]} : vector<2x8x96xf32> to vector<2x8x8xf32>
    %50 = vector.extract_strided_slice %6 {offsets = [0, 0, 80], sizes = [2, 8, 8], strides = [1, 1, 1]} : vector<2x8x96xf32> to vector<2x8x8xf32>
    "tpu.trace_start"() <{level = 10 : i32, message = "bqd,bkd->bqk"}> : () -> ()
    %cst_21 = arith.constant dense<0.000000e+00> : vector<2x8x8xf32>
    %51 = tpu.matmul %48, %49, %cst_21 {dimension_numbers = #tpu.dot_dimension_numbers<[2], [2], [1], [1], [0, 0, 0, 1, 1, 1], [0], [0]>} : vector<2x8x8xf32>, vector<2x8x8xf32>, vector<2x8x8xf32> -> vector<2x8x8xf32>
    "tpu.trace_stop"() : () -> ()
    %cst_22 = arith.constant dense<0xFF800000> : vector<2x8xf32>
    %52 = vector.multi_reduction <maximumf>, %51, %cst_22 [2] : vector<2x8x8xf32> to vector<2x8xf32>
    %53 = vector.shape_cast %52 : vector<2x8xf32> to vector<2x8x1xf32>
    %54 = vector.broadcast %53 : vector<2x8x1xf32> to vector<2x8x8xf32>
    %55 = arith.subf %51, %54 : vector<2x8x8xf32>
    %56 = math.exp %55 : vector<2x8x8xf32>
    %cst_23 = arith.constant dense<0.000000e+00> : vector<2x8xf32>
    %57 = vector.multi_reduction <add>, %56, %cst_23 [2] : vector<2x8x8xf32> to vector<2x8xf32>
    %58 = vector.shape_cast %57 : vector<2x8xf32> to vector<2x8x1xf32>
    %cst_24 = arith.constant 1.000000e+00 : f32
    %59 = vector.broadcast %cst_24 : f32 to vector<2x8x1xf32>
    %60 = arith.divf %59, %58 : vector<2x8x1xf32>
    %61 = vector.broadcast %60 : vector<2x8x1xf32> to vector<2x8x8xf32>
    %62 = arith.mulf %56, %61 : vector<2x8x8xf32>
    "tpu.trace_start"() <{level = 10 : i32, message = "bqk,bkd->bqd"}> : () -> ()
    %cst_25 = arith.constant dense<0.000000e+00> : vector<2x8x8xf32>
    %63 = tpu.matmul %62, %50, %cst_25 {dimension_numbers = #tpu.dot_dimension_numbers<[2], [1], [1], [2], [0, 0, 0, 1, 1, 2], [0], [0]>} : vector<2x8x8xf32>, vector<2x8x8xf32>, vector<2x8x8xf32> -> vector<2x8x8xf32>
    "tpu.trace_stop"() : () -> ()
    %64 = vector.shape_cast %63 : vector<2x8x8xf32> to vector<16x8xf32>
    %c16 = arith.constant 16 : index
    %c0_26 = arith.constant 0 : index
    %65 = vector.load %arg4[%c16, %c0_26] : memref<32x32xf32, #tpu.memory_space<vmem>>, vector<8x32xf32>
    %cst_27 = arith.constant dense<0.000000e+00> : vector<16x32xf32>
    %66 = tpu.matmul %64, %65, %cst_27 {dimension_numbers = #tpu.dot_dimension_numbers<[1], [0], [0], [1], [0, 0, 1, 1], [], []>} : vector<16x8xf32>, vector<8x32xf32>, vector<16x32xf32> -> vector<16x32xf32>
    %67 = arith.addf %47, %66 : vector<16x32xf32>
    %68 = vector.extract_strided_slice %6 {offsets = [0, 0, 24], sizes = [2, 8, 8], strides = [1, 1, 1]} : vector<2x8x96xf32> to vector<2x8x8xf32>
    %69 = vector.extract_strided_slice %6 {offsets = [0, 0, 56], sizes = [2, 8, 8], strides = [1, 1, 1]} : vector<2x8x96xf32> to vector<2x8x8xf32>
    %70 = vector.extract_strided_slice %6 {offsets = [0, 0, 88], sizes = [2, 8, 8], strides = [1, 1, 1]} : vector<2x8x96xf32> to vector<2x8x8xf32>
    "tpu.trace_start"() <{level = 10 : i32, message = "bqd,bkd->bqk"}> : () -> ()
    %cst_28 = arith.constant dense<0.000000e+00> : vector<2x8x8xf32>
    %71 = tpu.matmul %68, %69, %cst_28 {dimension_numbers = #tpu.dot_dimension_numbers<[2], [2], [1], [1], [0, 0, 0, 1, 1, 1], [0], [0]>} : vector<2x8x8xf32>, vector<2x8x8xf32>, vector<2x8x8xf32> -> vector<2x8x8xf32>
    "tpu.trace_stop"() : () -> ()
    %cst_29 = arith.constant dense<0xFF800000> : vector<2x8xf32>
    %72 = vector.multi_reduction <maximumf>, %71, %cst_29 [2] : vector<2x8x8xf32> to vector<2x8xf32>
    %73 = vector.shape_cast %72 : vector<2x8xf32> to vector<2x8x1xf32>
    %74 = vector.broadcast %73 : vector<2x8x1xf32> to vector<2x8x8xf32>
    %75 = arith.subf %71, %74 : vector<2x8x8xf32>
    %76 = math.exp %75 : vector<2x8x8xf32>
    %cst_30 = arith.constant dense<0.000000e+00> : vector<2x8xf32>
    %77 = vector.multi_reduction <add>, %76, %cst_30 [2] : vector<2x8x8xf32> to vector<2x8xf32>
    %78 = vector.shape_cast %77 : vector<2x8xf32> to vector<2x8x1xf32>
    %cst_31 = arith.constant 1.000000e+00 : f32
    %79 = vector.broadcast %cst_31 : f32 to vector<2x8x1xf32>
    %80 = arith.divf %79, %78 : vector<2x8x1xf32>
    %81 = vector.broadcast %80 : vector<2x8x1xf32> to vector<2x8x8xf32>
    %82 = arith.mulf %76, %81 : vector<2x8x8xf32>
    "tpu.trace_start"() <{level = 10 : i32, message = "bqk,bkd->bqd"}> : () -> ()
    %cst_32 = arith.constant dense<0.000000e+00> : vector<2x8x8xf32>
    %83 = tpu.matmul %82, %70, %cst_32 {dimension_numbers = #tpu.dot_dimension_numbers<[2], [1], [1], [2], [0, 0, 0, 1, 1, 2], [0], [0]>} : vector<2x8x8xf32>, vector<2x8x8xf32>, vector<2x8x8xf32> -> vector<2x8x8xf32>
    "tpu.trace_stop"() : () -> ()
    %84 = vector.shape_cast %83 : vector<2x8x8xf32> to vector<16x8xf32>
    %c24 = arith.constant 24 : index
    %c0_33 = arith.constant 0 : index
    %85 = vector.load %arg4[%c24, %c0_33] : memref<32x32xf32, #tpu.memory_space<vmem>>, vector<8x32xf32>
    %cst_34 = arith.constant dense<0.000000e+00> : vector<16x32xf32>
    %86 = tpu.matmul %84, %85, %cst_34 {dimension_numbers = #tpu.dot_dimension_numbers<[1], [0], [0], [1], [0, 0, 1, 1], [], []>} : vector<16x8xf32>, vector<8x32xf32>, vector<16x32xf32> -> vector<16x32xf32>
    %87 = arith.addf %67, %86 : vector<16x32xf32>
    %c0_35 = arith.constant 0 : index
    %c0_36 = arith.constant 0 : index
    %88 = vector.load %arg5[%c0_35, %c0_36] : memref<1x32xf32, #tpu.memory_space<vmem>>, vector<1x32xf32>
    %89 = vector.broadcast %88 : vector<1x32xf32> to vector<16x32xf32>
    %90 = arith.addf %87, %89 : vector<16x32xf32>
    %cst_37 = arith.constant dense<0.000000e+00> : vector<16xf32>
    %91 = vector.multi_reduction <add>, %90, %cst_37 [1] : vector<16x32xf32> to vector<16xf32>
    %92 = vector.shape_cast %91 : vector<16xf32> to vector<16x1xf32>
    %cst_38 = arith.constant 3.200000e+01 : f32
    %93 = vector.broadcast %cst_38 : f32 to vector<16x1xf32>
    %94 = arith.divf %92, %93 : vector<16x1xf32>
    %95 = vector.broadcast %94 : vector<16x1xf32> to vector<16x32xf32>
    %96 = arith.subf %90, %95 : vector<16x32xf32>
    %97 = arith.mulf %96, %96 : vector<16x32xf32>
    %cst_39 = arith.constant dense<0.000000e+00> : vector<16xf32>
    %98 = vector.multi_reduction <add>, %97, %cst_39 [1] : vector<16x32xf32> to vector<16xf32>
    %99 = vector.shape_cast %98 : vector<16xf32> to vector<16x1xf32>
    %cst_40 = arith.constant 3.200000e+01 : f32
    %100 = vector.broadcast %cst_40 : f32 to vector<16x1xf32>
    %101 = arith.divf %99, %100 : vector<16x1xf32>
    %cst_41 = arith.constant 9.99999974E-6 : f32
    %102 = vector.broadcast %cst_41 : f32 to vector<16x1xf32>
    %103 = arith.addf %101, %102 : vector<16x1xf32>
    %104 = math.rsqrt %103 : vector<16x1xf32>
    %105 = vector.broadcast %104 : vector<16x1xf32> to vector<16x32xf32>
    %106 = arith.mulf %96, %105 : vector<16x32xf32>
    %c0_42 = arith.constant 0 : index
    %c0_43 = arith.constant 0 : index
    %107 = vector.load %arg6[%c0_42, %c0_43] : memref<1x32xf32, #tpu.memory_space<vmem>>, vector<1x32xf32>
    %108 = vector.broadcast %107 : vector<1x32xf32> to vector<16x32xf32>
    %109 = arith.mulf %106, %108 : vector<16x32xf32>
    %c0_44 = arith.constant 0 : index
    %c0_45 = arith.constant 0 : index
    %110 = vector.load %arg7[%c0_44, %c0_45] : memref<1x32xf32, #tpu.memory_space<vmem>>, vector<1x32xf32>
    %111 = vector.broadcast %110 : vector<1x32xf32> to vector<16x32xf32>
    %112 = arith.addf %109, %111 : vector<16x32xf32>
    %c0_46 = arith.constant 0 : index
    %c0_47 = arith.constant 0 : index
    %113 = vector.load %arg8[%c0_46, %c0_47] : memref<16x32xf32, #tpu.memory_space<vmem>>, vector<16x32xf32>
    tpu.vector_store %arg8[%c0_46, %c0_47], %112 {strides = array<i32>} : memref<16x32xf32, #tpu.memory_space<vmem>>, vector<16x32xf32>,
    return
  }
  func.func @transform_0(%arg0: i32) -> (i32, i32) {
    %c0_i32 = arith.constant 0 : i32
    %c0_i32_0 = arith.constant 0 : i32
    %c0_i32_1 = arith.constant 0 : i32
    return %c0_i32, %c0_i32_0 : i32, i32
  }
  func.func @transform_1(%arg0: i32) -> (i32, i32) {
    %c0_i32 = arith.constant 0 : i32
    %c0_i32_0 = arith.constant 0 : i32
    %c0_i32_1 = arith.constant 0 : i32
    return %c0_i32, %c0_i32_0 : i32, i32
  }
  func.func @transform_2(%arg0: i32) -> (i32, i32) {
    %c0_i32 = arith.constant 0 : i32
    %c0_i32_0 = arith.constant 0 : i32
    %c0_i32_1 = arith.constant 0 : i32
    return %c0_i32, %c0_i32_0 : i32, i32
  }
  func.func @transform_3(%arg0: i32) -> (i32, i32) {
    %c0_i32 = arith.constant 0 : i32
    %c0_i32_0 = arith.constant 0 : i32
    %c0_i32_1 = arith.constant 0 : i32
    return %c0_i32, %c0_i32_0 : i32, i32
  }
  func.func @transform_4(%arg0: i32) -> (i32, i32) {
    %c0_i32 = arith.constant 0 : i32
    %c0_i32_0 = arith.constant 0 : i32
    %c0_i32_1 = arith.constant 0 : i32
    return %c0_i32, %c0_i32_0 : i32, i32
  }
  func.func @transform_5(%arg0: i32) -> (i32, i32) {
    %c0_i32 = arith.constant 0 : i32
    %c0_i32_0 = arith.constant 0 : i32
    %c0_i32_1 = arith.constant 0 : i32
    return %c0_i32, %c0_i32_0 : i32, i32
  }
  func.func @transform_6(%arg0: i32) -> (i32, i32) {
    %c0_i32 = arith.constant 0 : i32
    %c0_i32_0 = arith.constant 0 : i32
    %c0_i32_1 = arith.constant 0 : i32
    return %c0_i32, %c0_i32_0 : i32, i32
  }
  func.func @transform_7(%arg0: i32) -> (i32, i32) {
    %c0_i32 = arith.constant 0 : i32
    %c0_i32_0 = arith.constant 0 : i32
    %c0_i32_1 = arith.constant 0 : i32
    return %c0_i32, %c0_i32_0 : i32, i32
  }
}

</mosaic_0001>

<bundles_post_ra>
// kernel: tpu_custom_call.1
= control target key start
LH: loop header
LB: loop body
LE: loop exit
PB: predicated region body
PF: predicated region fallthrough
CT: control target
= control target key end

     0   :  { %12 = vsyncpa [#allocation3], 0  ;;  %s1354_s0 = inlined_call_operand.hbm [shape: f32[16,32], index: 0, kind: input, shape index: {}]   ;;  %s1355_s1 = inlined_call_operand.hbm [shape: f32[32,96], index: 1, kind: input, shape index: {}]   ;;  %s1356_s2 = inlined_call_operand.vmem [shape: f32[1,96], index: 2, kind: input, shape index: {}]   ;;  %s1357_s3 = inlined_call_operand.hbm [shape: f32[32,32], index: 3, kind: input, shape index: {}]   ;;  %s1358_s4 = inlined_call_operand.vmem [shape: f32[1,32], index: 4, kind: input, shape index: {}]   ;;  %s1359_s5 = inlined_call_operand.vmem [shape: f32[1,32], index: 5, kind: input, shape index: {}]   ;;  %s1360_s6 = inlined_call_operand.vmem [shape: f32[1,32], index: 6, kind: input, shape index: {}]   ;;  %s1361_s7 = inlined_call_operand.hbm [shape: f32[16,32], index: 7, kind: output, shape index: {}]  }
   0x1   :  { %13 = vsyncpa [#allocation6], 0 }
   0x2   :  { %14 = vsyncpa [#allocation4], 0  ;;  %s32_s26 = sshll.u32 %s1355_s1, 4  ;;  %s1156_s27 = smov [#allocation5]   ;;  %s33_s26 = int_to_ptr.hbm [resolvable:$true] %s32_s26 }
   0x3   :  { %s34_s28 = sshll.u32 %s1156_s27, 4  ;;  %s19_s8 = sshll.u32 %s1354_s0, 4  ;;  %s35_s28 = int_to_ptr.vmem [resolvable:$true] %s34_s28  ;;  %s20_s8 = int_to_ptr.hbm [resolvable:$true] %s19_s8 }
   0x4   :  { %s1157_s9 = smov 128   ;;  %s1158_s10 = smov 8  }
   0x5   :  { %40 = dma.hbm_to_vmem [thread:$0]  %s33_s26, 512, %s35_s28, [#allocation6], %s1157_s9, %s1157_s9, %s1158_s10  }
   0x6   :  { %s1159_s11 = smov [#allocation2]   ;;  %s47_s1 = sshll.u32 %s1357_s3, 4  ;;  %s48_s1 = int_to_ptr.hbm [resolvable:$true] %s47_s1 }
   0x7   :  { %s21_s12 = sshll.u32 %s1159_s11, 4  ;;  %s1160_s0 = smov [#allocation7]   ;;  %s22_s12 = int_to_ptr.vmem [resolvable:$true] %s21_s12 }
   0x8   :  { %27 = dma.hbm_to_vmem [thread:$0]  %s20_s8, 256, %s22_s12, [#allocation3], %s1157_s9, %s1157_s9, %s1158_s10  }
   0x9   :  { %s49_s15 = sshll.u32 %s1160_s0, 4  ;;  %s50_s15 = int_to_ptr.vmem [resolvable:$true] %s49_s15 }
   0xa   :  { %55 = dma.hbm_to_vmem [thread:$0]  %s48_s1, 512, %s50_s15, [#allocation6], %s1157_s9, %s1157_s9, %s1158_s10  }
   0xb   :  { %1150 = dma.done.wait [#allocation3], 256  }
   0xc   :  { %1151 = vsyncadd [#allocation3], 4294967040 }
   0xd   :  { %1152 = dma.done.wait [#allocation6], 1024  }
   0xe   :  { %1153 = vsyncadd [#allocation6], 4294966272  ;;  %v79_v0 = vld [vmem:[#allocation5 + $0x18] sm:$0xff]  ;;  %v78_v1 = vld [vmem:[#allocation5 + $0x10] sm:$0xff]  ;;  %vm84_vm0 = vcmask 261120   ;;  %s1161_s17 = smov 64  }
   0xf   :  { %103 = vmatpush.msra.mxu0 %v79_v0  ;;  %v77_v2 = vld [vmem:[#allocation5 + $0x8] sm:$0xff]  ;;  %v76_v3 = vld [vmem:[#allocation5] sm:$0xff]  ;;  %v74_v4 = vld [vmem:[#allocation2] sm:$0xff]  ;;  %s1162_s18 = smov 96   ;;  %s1163_s19 = smov 88   ;;  %vm117_vm1 = vcmask 64512  }
  0x10   :  { %v1012_v5 = vld [vmem:[%s1356_s2] ss:$0 sm:$0xff]  ;;  %s1164_s20 = smov 120   ;;  %v75_v11 = vld [vmem:[#allocation2 + $0x8] sm:$0xff]  ;;  %v271_v35 = vld [vmem:[#allocation7] sm:$0xff]  ;;  %s1165_s2 = smov 80  }
  0x11   :  { %104 = vmatpush.msra.mxu0 %v78_v1  ;;  %s1166_s21 = smov 56   ;;  %s1167_s22 = smov 112  }
  0x12   :  { %s1168_s23 = smov 72   ;;  %s1169_s24 = smov 104  }
  0x13   :  { %105 = vmatpush.msra.mxu0 %v77_v2  ;;  %s1170_s25 = smov 48   ;;  %s1171_s26 = smov 40  }
  0x14   :  { %s946_s13 = sshll.u32 %s1361_s7, 4  ;;  %s947_s13 = int_to_ptr.hbm [resolvable:$true] %s946_s13 }
  0x15   :  { %106 = vmatpush.msra.mxu0 %v76_v3 }
  0x16   :  { %960 = vmatmul.msk.f32.vlgmr.msra.gmra.mxu0 %vm84_vm0, %v74_v4 }
  0x17   :  { %481 = vmatpush.msrb.mxu0 %v271_v35 }
  0x1e   :  { %961 = vmatmul.msk.f32.gmra.mxu0 %vm84_vm0, %v75_v11 }
  0x93   :  { %v108_v6 = vpop.f32.mrf.mxu0 }
  0x94   :  { %v1236_v7 = vadd.f32 %v1012_v5, %v108_v6 }
  0x96   :  { %219 = vrot.lane.b32.xlu2 %v1236_v7, %s1161_s17  ;;  %115 = vrot.lane.b32.xlu0 %v1236_v7, %s1162_s18 }
  0x9b   :  { %v111_v19 = vpop.f32.mrf.mxu0 }
  0x9c   :  { %v1252_v20 = vadd.f32 %v1012_v5, %v111_v19 }
  0x9e   :  { %274 = vrot.lane.b32.xlu2 %v1236_v7, %s1163_s19 }
  0xa6   :  { %272 = vrot.lane.b32.xlu2 %v1236_v7, %s1164_s20 }
  0xf0   :  { %v220_v8 = vpop.permute.xlu2 %219 }
  0xf8   :  { %v275_v10 = vpop.permute.xlu2 %274 }
 0x100   :  { %v273_v34 = vpop.permute.xlu2 %272 }
 0x108   :  { %v116_v9 = vpop.permute.xlu0 %115 }
 0x109   :  { %962 = vmatpush.xpose.msk.msra.mxu1 %vm117_vm1, %v116_v9 }
 0x10c   :  { %963 = vmatmul.msk.f32.vlgmr.msra.gmra.mxu1 %vm117_vm1, %v1236_v7 }
 0x10d   :  { %240 = vmatpush.msrb.mxu1 %v220_v8 }
 0x10f   :  { %968 = vmatpush.xpose.msk.msra.mxu1 %vm117_vm1, %v275_v10 }
 0x189   :  { %v139_v12 = vpop.f32.mrf.mxu1 }
 0x18a   :  { %v169_v13 = vsel %vm117_vm1, %v139_v12, -inf }
 0x18b   :  { %170 = vmax.xlane.f32.xlu0 %v169_v13 }
 0x1fe   :  { %v171_v14 = vpop.xlane.xlu0 %170 }
 0x1ff   :  { %v175_v15 = vsub.f32 %v139_v12, %v171_v14 }
 0x201   :  { %v177_v16 = vmul.f32 1.442695, %v175_v15 }
 0x203   :  { %1016 = vpow2.f32 %v177_v16 }
 0x209   :  { %v1017_v17 = vpop.eup %1016 }
 0x20a   :  { %v181_v18 = vsel %vm117_vm1, %v1017_v17, 0.0 }
 0x20b   :  { %182 = vadd.xlane.f32.xlu1 %v181_v18 }
 0x224   :  { %143 = vrot.lane.b32.xlu1 %v1252_v20, %s1162_s18 }
 0x27e   :  { %v183_v21 = vpop.xlane.xlu1 %182 }
 0x27f   :  { %1018 = vrcp.f32 %v183_v21  ;;  %v198_v25 = vand.u32 2147483648, %v183_v21  ;;  %v196_v27 = vand.u32 2147483647, %v183_v21  ;;  %vm192_vm3 = vweird.f32 %v183_v21 }
 0x281   :  { %v199_v29 = vor.u32 1.1754944e-38, %v198_v25  ;;  %vm197_vm5 = vcmp.eq.f32.partialorder %v196_v27, 8.507059e+37 }
 0x285   :  { %v1019_v22 = vpop.eup %1018 }
 0x286   :  { %v188_v23 = vmul.f32 %v1019_v22, %v183_v21  ;;  %vm193_vm2 = vweird.f32 %v1019_v22 }
 0x287   :  { %vm194_vm4 = vmor %vm192_vm3, %vm193_vm2 }
 0x288   :  { %v189_v24 = vsub.f32 1.0, %v188_v23 }
 0x28a   :  { %v190_v26 = vmul.f32 %v1019_v22, %v189_v24 }
 0x28c   :  { %v191_v28 = vadd.f32 %v1019_v22, %v190_v26 }
 0x28e   :  { %v195_v30 = vsel %vm194_vm4, %v1019_v22, %v191_v28  ;;  %v430_v22 = vld [vmem:[#allocation7 + $0x8] sm:$0xff] }
 0x28f   :  { %v200_v31 = vsel %vm197_vm5, %v199_v29, %v195_v30 }
 0x290   :  { %v217_v32 = vmul.f32 %v1017_v17, %v200_v31 }
 0x292   :  { %966 = vmatmul.msk.f32.vlgmr.msrb.gmra.mxu1 %vm117_vm1, %v217_v32 }
 0x296   :  { %v144_v33 = vpop.permute.xlu1 %143 }
 0x297   :  { %964 = vmatpush.xpose.msk.msra.mxu2 %vm117_vm1, %v144_v33 }
 0x29a   :  { %965 = vmatmul.msk.f32.vlgmr.msra.gmra.mxu2 %vm117_vm1, %v1252_v20  ;;  %969 = vmatmul.msk.f32.vlgmr.msra.gmra.mxu1 %vm117_vm1, %v273_v34 }
 0x30f   :  { %v242_v36 = vpop.f32.mrf.mxu1 }
 0x310   :  { %976 = vmatmul.msk.f32.vlgmr.msrb.gmra.mxu0 %vm117_vm1, %v242_v36 }
 0x317   :  { %v297_v37 = vpop.f32.mrf.mxu1 }
 0x318   :  { %v328_v38 = vsel %vm117_vm1, %v297_v37, -inf }
 0x319   :  { %329 = vmax.xlane.f32.xlu1 %v328_v38 }
 0x31d   :  { %v166_v39 = vpop.f32.mrf.mxu2 }
 0x31e   :  { %v172_v40 = vsel %vm117_vm1, %v166_v39, -inf }
 0x31f   :  { %173 = vmax.xlane.f32.xlu2 %v172_v40 }
 0x332   :  { %300 = vrot.lane.b32.xlu1 %v1252_v20, %s1164_s20 }
 0x337   :  { %245 = vrot.lane.b32.xlu2 %v1252_v20, %s1161_s17 }
 0x33f   :  { %491 = vrot.lane.b32.xlu2 %v1236_v7, %s1165_s2 }
 0x38c   :  { %v330_v47 = vpop.xlane.xlu1 %329 }
 0x38d   :  { %v334_v48 = vsub.f32 %v297_v37, %v330_v47 }
 0x38f   :  { %v336_v49 = vmul.f32 1.442695, %v334_v48 }
 0x392   :  { %v174_v41 = vpop.xlane.xlu2 %173 }
 0x393   :  { %v176_v42 = vsub.f32 %v166_v39, %v174_v41 }
 0x395   :  { %v179_v43 = vmul.f32 1.442695, %v176_v42 }
 0x397   :  { %1020 = vpow2.f32 %v179_v43 }
 0x398   :  { %1022 = vpow2.f32 %v336_v49 }
 0x39a   :  { %v246_v44 = vpop.permute.xlu2 %245 }
 0x39b   :  { %266 = vmatpush.msra.mxu3 %v246_v44 }
 0x39d   :  { %v1021_v45 = vpop.eup %1020 }
 0x39e   :  { %v184_v46 = vsel %vm117_vm1, %v1021_v45, 0.0  ;;  %v1023_v50 = vpop.eup %1022 }
 0x39f   :  { %185 = vadd.xlane.f32.xlu0 %v184_v46  ;;  %v340_v51 = vsel %vm117_vm1, %v1023_v50, 0.0 }
 0x3a2   :  { %v492_v3 = vpop.permute.xlu2 %491 }
 0x3a4   :  { %v301_v1 = vpop.permute.xlu1 %300 }
 0x3b3   :  { %302 = vrot.lane.b32.xlu0 %v1252_v20, %s1163_s19 }
 0x3bb   :  { %378 = vrot.lane.b32.xlu0 %v1236_v7, %s1166_s21 }
 0x3e5   :  { %341 = vadd.xlane.f32.xlu0 %v340_v51 }
 0x3f9   :  { %489 = vrot.lane.b32.xlu0 %v1236_v7, %s1167_s22 }
 0x412   :  { %v186_v52 = vpop.xlane.xlu0 %185 }
 0x413   :  { %1024 = vrcp.f32 %v186_v52  ;;  %v213_v56 = vand.u32 2147483648, %v186_v52  ;;  %v211_v58 = vand.u32 2147483647, %v186_v52  ;;  %vm207_vm7 = vweird.f32 %v186_v52 }
 0x415   :  { %v214_v60 = vor.u32 1.1754944e-38, %v213_v56  ;;  %vm212_vm9 = vcmp.eq.f32.partialorder %v211_v58, 8.507059e+37 }
 0x419   :  { %v1025_v53 = vpop.eup %1024 }
 0x41a   :  { %v203_v54 = vmul.f32 %v1025_v53, %v186_v52  ;;  %vm208_vm6 = vweird.f32 %v1025_v53 }
 0x41b   :  { %vm209_vm8 = vmor %vm207_vm7, %vm208_vm6 }
 0x41c   :  { %v204_v55 = vsub.f32 1.0, %v203_v54 }
 0x41e   :  { %v205_v57 = vmul.f32 %v1025_v53, %v204_v55 }
 0x420   :  { %v206_v59 = vadd.f32 %v1025_v53, %v205_v57 }
 0x422   :  { %v210_v61 = vsel %vm209_vm8, %v1025_v53, %v206_v59 }
 0x423   :  { %v215_v62 = vsel %vm212_vm9, %v214_v60, %v210_v61 }
 0x424   :  { %v218_v63 = vmul.f32 %v1021_v45, %v215_v62 }
 0x425   :  { %v303_v0 = vpop.permute.xlu0 %302 }
 0x426   :  { %967 = vmatmul.msk.f32.vlgmr.msra.gmra.mxu3 %vm117_vm1, %v218_v63  ;;  %970 = vmatpush.xpose.msk.msrb.mxu2 %vm117_vm1, %v303_v0 }
 0x429   :  { %971 = vmatmul.msk.f32.vlgmr.msrb.gmra.mxu2 %vm117_vm1, %v301_v1 }
 0x42a   :  { %452 = vmatpush.msra.mxu2 %v430_v22 }
 0x42d   :  { %v379_v2 = vpop.permute.xlu0 %378 }
 0x42e   :  { %399 = vmatpush.msrb.mxu3 %v379_v2 }
 0x430   :  { %978 = vmatpush.xpose.msk.msra.mxu3 %vm117_vm1, %v492_v3 }
 0x458   :  { %v342_v4 = vpop.xlane.xlu0 %341 }
 0x459   :  { %1026 = vrcp.f32 %v342_v4  ;;  %v357_v9 = vand.u32 2147483648, %v342_v4  ;;  %v355_v11 = vand.u32 2147483647, %v342_v4  ;;  %vm351_vm11 = vweird.f32 %v342_v4 }
 0x45b   :  { %v358_v13 = vor.u32 1.1754944e-38, %v357_v9  ;;  %vm356_vm13 = vcmp.eq.f32.partialorder %v355_v11, 8.507059e+37 }
 0x45f   :  { %v1027_v5 = vpop.eup %1026 }
 0x460   :  { %v347_v6 = vmul.f32 %v1027_v5, %v342_v4  ;;  %vm352_vm10 = vweird.f32 %v1027_v5  ;;  %v1309_v4 = vpop.f32.mrf.mxu0 }
 0x461   :  { %vm353_vm12 = vmor %vm351_vm11, %vm352_vm10 }
 0x462   :  { %v348_v8 = vsub.f32 1.0, %v347_v6 }
 0x464   :  { %v349_v10 = vmul.f32 %v1027_v5, %v348_v8 }
 0x466   :  { %v350_v12 = vadd.f32 %v1027_v5, %v349_v10 }
 0x468   :  { %v354_v14 = vsel %vm353_vm12, %v1027_v5, %v350_v12  ;;  %v647_v12 = vld [vmem:[#allocation7 + $0x10] sm:$0xff] }
 0x469   :  { %v359_v15 = vsel %vm356_vm13, %v358_v13, %v354_v14  ;;  %669 = vmatpush.msrb.mxu2 %v647_v12 }
 0x46a   :  { %v376_v16 = vmul.f32 %v1023_v50, %v359_v15 }
 0x46b   :  { %v490_v17 = vpop.permute.xlu0 %489 }
 0x46c   :  { %972 = vmatmul.msk.f32.vlgmr.msrb.gmra.mxu3 %vm117_vm1, %v376_v16 }
 0x474   :  { %979 = vmatmul.msk.f32.vlgmr.msra.gmra.mxu3 %vm117_vm1, %v490_v17 }
 0x4a9   :  { %v268_v18 = vpop.f32.mrf.mxu3 }
 0x4aa   :  { %977 = vmatmul.msk.f32.gmra.mxu0 %vm117_vm1, %v268_v18 }
 0x4ac   :  { %v325_v19 = vpop.f32.mrf.mxu2 }
 0x4ad   :  { %v331_v21 = vsel %vm117_vm1, %v325_v19, -inf }
 0x4ae   :  { %332 = vmax.xlane.f32.xlu2 %v331_v21 }
 0x4c6   :  { %517 = vrot.lane.b32.xlu2 %v1252_v20, %s1167_s22 }
 0x4ef   :  { %v401_v23 = vpop.f32.mrf.mxu3 }
 0x4f0   :  { %974 = vmatmul.msk.f32.vlgmr.msra.gmra.mxu2 %vm117_vm1, %v401_v23 }
 0x4f7   :  { %v514_v24 = vpop.f32.mrf.mxu3 }
 0x4f8   :  { %v545_v25 = vsel %vm117_vm1, %v514_v24, -inf }
 0x4f9   :  { %546 = vmax.xlane.f32.xlu1 %v545_v25 }
 0x512   :  { %404 = vrot.lane.b32.xlu1 %v1252_v20, %s1166_s21 }
 0x51a   :  { %681 = vrot.lane.b32.xlu1 %v1236_v7, %s1168_s23 }
 0x521   :  { %v333_v26 = vpop.xlane.xlu2 %332 }
 0x522   :  { %v335_v27 = vsub.f32 %v325_v19, %v333_v26  ;;  %707 = vrot.lane.b32.xlu1 %v1252_v20, %s1169_s24 }
 0x524   :  { %v338_v28 = vmul.f32 1.442695, %v335_v27 }
 0x526   :  { %1028 = vpow2.f32 %v338_v28 }
 0x527   :  { %v1312_v6 = vpop.f32.mrf.mxu0 }
 0x529   :  { %v518_v51 = vpop.permute.xlu2 %517 }
 0x52c   :  { %v1029_v29 = vpop.eup %1028 }
 0x52d   :  { %v343_v30 = vsel %vm117_vm1, %v1029_v29, 0.0 }
 0x52e   :  { %344 = vadd.xlane.f32.xlu0 %v343_v30 }
 0x542   :  { %519 = vrot.lane.b32.xlu0 %v1252_v20, %s1165_s2 }
 0x54a   :  { %595 = vrot.lane.b32.xlu0 %v1236_v7, %s1170_s25 }
 0x552   :  { %679 = vrot.lane.b32.xlu0 %v1236_v7, %s1169_s24 }
 0x56c   :  { %v547_v31 = vpop.xlane.xlu1 %546 }
 0x56d   :  { %v551_v32 = vsub.f32 %v514_v24, %v547_v31 }
 0x56f   :  { %v553_v33 = vmul.f32 1.442695, %v551_v32 }
 0x571   :  { %1030 = vpow2.f32 %v553_v33 }
 0x573   :  { %v454_v12 = vpop.f32.mrf.mxu2 }
 0x577   :  { %v1031_v34 = vpop.eup %1030 }
 0x578   :  { %v557_v35 = vsel %vm117_vm1, %v1031_v34, 0.0 }
 0x579   :  { %558 = vadd.xlane.f32.xlu2 %v557_v35 }
 0x584   :  { %v405_v36 = vpop.permute.xlu1 %404 }
 0x585   :  { %425 = vmatpush.msrb.mxu1 %v405_v36 }
 0x58c   :  { %v682_v37 = vpop.permute.xlu1 %681 }
 0x58d   :  { %986 = vmatpush.xpose.msk.msra.mxu0 %vm117_vm1, %v682_v37 }
 0x591   :  { %709 = vrot.lane.b32.xlu2 %v1252_v20, %s1168_s23 }
 0x594   :  { %v708_v3 = vpop.permute.xlu1 %707 }
 0x5a1   :  { %v345_v38 = vpop.xlane.xlu0 %344 }
 0x5a2   :  { %1032 = vrcp.f32 %v345_v38  ;;  %v372_v42 = vand.u32 2147483648, %v345_v38  ;;  %v370_v44 = vand.u32 2147483647, %v345_v38  ;;  %vm366_vm15 = vweird.f32 %v345_v38 }
 0x5a4   :  { %v373_v46 = vor.u32 1.1754944e-38, %v372_v42  ;;  %vm371_vm3 = vcmp.eq.f32.partialorder %v370_v44, 8.507059e+37 }
 0x5a8   :  { %v1033_v39 = vpop.eup %1032 }
 0x5a9   :  { %v362_v40 = vmul.f32 %v1033_v39, %v345_v38  ;;  %vm367_vm14 = vweird.f32 %v1033_v39 }
 0x5aa   :  { %vm368_vm2 = vmor %vm366_vm15, %vm367_vm14 }
 0x5ab   :  { %v363_v41 = vsub.f32 1.0, %v362_v40 }
 0x5ad   :  { %v364_v43 = vmul.f32 %v1033_v39, %v363_v41 }
 0x5af   :  { %v365_v45 = vadd.f32 %v1033_v39, %v364_v43 }
 0x5b1   :  { %v369_v47 = vsel %vm368_vm2, %v1033_v39, %v365_v45 }
 0x5b2   :  { %v374_v48 = vsel %vm371_vm3, %v373_v46, %v369_v47 }
 0x5b3   :  { %v377_v49 = vmul.f32 %v1029_v29, %v374_v48 }
 0x5b4   :  { %v520_v50 = vpop.permute.xlu0 %519 }
 0x5b5   :  { %973 = vmatmul.msk.f32.vlgmr.msrb.gmra.mxu1 %vm117_vm1, %v377_v49 }
 0x5b6   :  { %980 = vmatpush.xpose.msk.msra.mxu1 %vm117_vm1, %v520_v50 }
 0x5bc   :  { %v596_v52 = vpop.permute.xlu0 %595 }
 0x5bd   :  { %981 = vmatmul.msk.f32.vlgmr.msra.gmra.mxu1 %vm117_vm1, %v518_v51  ;;  %616 = vmatpush.msrb.mxu3 %v596_v52 }
 0x5c4   :  { %v680_v53 = vpop.permute.xlu0 %679 }
 0x5c5   :  { %987 = vmatmul.msk.f32.vlgmr.msra.gmra.mxu0 %vm117_vm1, %v680_v53 }
 0x5ec   :  { %v559_v54 = vpop.xlane.xlu2 %558 }
 0x5ed   :  { %1034 = vrcp.f32 %v559_v54  ;;  %v574_v59 = vand.u32 2147483648, %v559_v54  ;;  %v572_v61 = vand.u32 2147483647, %v559_v54  ;;  %vm568_vm5 = vweird.f32 %v559_v54 }
 0x5ef   :  { %v575_v63 = vor.u32 1.1754944e-38, %v574_v59  ;;  %vm573_vm7 = vcmp.eq.f32.partialorder %v572_v61, 8.507059e+37 }
 0x5f3   :  { %v1035_v55 = vpop.eup %1034 }
 0x5f4   :  { %v564_v56 = vmul.f32 %v1035_v55, %v559_v54  ;;  %v710_v57 = vpop.permute.xlu2 %709  ;;  %vm569_vm4 = vweird.f32 %v1035_v55 }
 0x5f5   :  { %988 = vmatpush.xpose.msk.msra.mxu3 %vm117_vm1, %v710_v57  ;;  %vm570_vm6 = vmor %vm568_vm5, %vm569_vm4 }
 0x5f6   :  { %v565_v58 = vsub.f32 1.0, %v564_v56 }
 0x5f8   :  { %v566_v60 = vmul.f32 %v1035_v55, %v565_v58 }
 0x5fa   :  { %v567_v62 = vadd.f32 %v1035_v55, %v566_v60 }
 0x5fc   :  { %v571_v0 = vsel %vm570_vm6, %v1035_v55, %v567_v62 }
 0x5fd   :  { %v576_v1 = vsel %vm573_vm7, %v575_v63, %v571_v0 }
 0x5fe   :  { %v593_v2 = vmul.f32 %v1031_v34, %v576_v1 }
 0x600   :  { %982 = vmatmul.msk.f32.vlgmr.msrb.gmra.mxu3 %vm117_vm1, %v593_v2 }
 0x608   :  { %989 = vmatmul.msk.f32.vlgmr.msra.gmra.mxu3 %vm117_vm1, %v708_v3 }
 0x632   :  { %v427_v5 = vpop.f32.mrf.mxu1 }
 0x633   :  { %975 = vmatmul.msk.f32.gmra.mxu2 %vm117_vm1, %v427_v5 }
 0x63a   :  { %v542_v8 = vpop.f32.mrf.mxu1 }
 0x63b   :  { %v548_v9 = vsel %vm117_vm1, %v542_v8, -inf }
 0x63c   :  { %549 = vmax.xlane.f32.xlu2 %v548_v9 }
 0x642   :  { %v704_v10 = vpop.f32.mrf.mxu0 }
 0x643   :  { %v735_v11 = vsel %vm117_vm1, %v704_v10, -inf }
 0x644   :  { %736 = vmax.xlane.f32.xlu0 %v735_v11 }
 0x683   :  { %v618_v13 = vpop.f32.mrf.mxu3 }
 0x684   :  { %984 = vmatmul.msk.f32.vlgmr.msrb.gmra.mxu2 %vm117_vm1, %v618_v13 }
 0x68b   :  { %v732_v14 = vpop.f32.mrf.mxu3 }
 0x68c   :  { %v738_v15 = vsel %vm117_vm1, %v732_v14, -inf }
 0x68d   :  { %739 = vmax.xlane.f32.xlu1 %v738_v15  ;;  %v484_v15 = vadd.f32 %v1309_v4, %v454_v12 }
 0x6af   :  { %v550_v16 = vpop.xlane.xlu2 %549 }
 0x6b0   :  { %v552_v17 = vsub.f32 %v542_v8, %v550_v16  ;;  %v837_v8 = vld [vmem:[#allocation7 + $0x18] sm:$0xff] }
 0x6b1   :  { %859 = vmatpush.msrb.mxu3 %v837_v8 }
 0x6b2   :  { %v555_v18 = vmul.f32 1.442695, %v552_v17  ;;  %v1013_v17 = vld [vmem:[%s1358_s4] ss:$0 sm:$0xff] }
 0x6b4   :  { %1036 = vpow2.f32 %v555_v18 }
 0x6b6   :  { %v457_v13 = vpop.f32.mrf.mxu2 }
 0x6b7   :  { %v737_v19 = vpop.xlane.xlu0 %736 }
 0x6b8   :  { %v741_v21 = vsub.f32 %v704_v10, %v737_v19 }
 0x6ba   :  { %v1037_v22 = vpop.eup %1036  ;;  %v743_v23 = vmul.f32 1.442695, %v741_v21 }
 0x6bb   :  { %v560_v24 = vsel %vm117_vm1, %v1037_v22, 0.0 }
 0x6bc   :  { %1038 = vpow2.f32 %v743_v23  ;;  %561 = vadd.xlane.f32.xlu2 %v560_v24  ;;  %v487_v24 = vadd.f32 %v1312_v6, %v457_v13 }
 0x6c2   :  { %v1039_v25 = vpop.eup %1038 }
 0x6c3   :  { %v747_v26 = vsel %vm117_vm1, %v1039_v25, 0.0 }
 0x6c4   :  { %748 = vadd.xlane.f32.xlu0 %v747_v26 }
 0x6d4   :  { %621 = vrot.lane.b32.xlu2 %v1252_v20, %s1170_s25 }
 0x6d8   :  { %785 = vrot.lane.b32.xlu0 %v1236_v7, %s1171_s26 }
 0x700   :  { %v740_v27 = vpop.xlane.xlu1 %739 }
 0x701   :  { %v742_v28 = vsub.f32 %v732_v14, %v740_v27 }
 0x703   :  { %v745_v29 = vmul.f32 1.442695, %v742_v28 }
 0x705   :  { %1040 = vpow2.f32 %v745_v29  ;;  %v1172_v29 = vmov 32.0  }
 0x707   :  { %v671_v14 = vpop.f32.mrf.mxu2 }
 0x708   :  { %v677_v16 = vadd.f32 %v671_v14, %v484_v15 }
 0x70b   :  { %v1041_v30 = vpop.eup %1040 }
 0x70c   :  { %v750_v31 = vsel %vm117_vm1, %v1041_v30, 0.0 }
 0x70d   :  { %751 = vadd.xlane.f32.xlu1 %v750_v31 }
 0x726   :  { %811 = vrot.lane.b32.xlu1 %v1252_v20, %s1171_s26 }
 0x72f   :  { %v562_v32 = vpop.xlane.xlu2 %561 }
 0x730   :  { %1042 = vrcp.f32 %v562_v32  ;;  %v589_v7 = vand.u32 2147483648, %v562_v32  ;;  %v587_v39 = vand.u32 2147483647, %v562_v32  ;;  %vm583_vm9 = vweird.f32 %v562_v32 }
 0x732   :  { %v590_v42 = vor.u32 1.1754944e-38, %v589_v7  ;;  %vm588_vm11 = vcmp.eq.f32.partialorder %v587_v39, 8.507059e+37 }
 0x736   :  { %v1043_v33 = vpop.eup %1042 }
 0x737   :  { %v579_v34 = vmul.f32 %v1043_v33, %v562_v32  ;;  %v622_v35 = vpop.permute.xlu2 %621  ;;  %v749_v36 = vpop.xlane.xlu0 %748  ;;  %vm584_vm8 = vweird.f32 %v1043_v33 }
 0x738   :  { %1044 = vrcp.f32 %v749_v36  ;;  %642 = vmatpush.msrb.mxu1 %v622_v35  ;;  %vm585_vm10 = vmor %vm583_vm9, %vm584_vm8  ;;  %v764_v47 = vand.u32 2147483648, %v749_v36  ;;  %v762_v49 = vand.u32 2147483647, %v749_v36  ;;  %vm758_vm13 = vweird.f32 %v749_v36 }
 0x739   :  { %v580_v37 = vsub.f32 1.0, %v579_v34 }
 0x73a   :  { %v765_v51 = vor.u32 1.1754944e-38, %v764_v47  ;;  %vm763_vm15 = vcmp.eq.f32.partialorder %v762_v49, 8.507059e+37 }
 0x73b   :  { %v581_v38 = vmul.f32 %v1043_v33, %v580_v37 }
 0x73d   :  { %v582_v40 = vadd.f32 %v1043_v33, %v581_v38 }
 0x73e   :  { %v1045_v41 = vpop.eup %1044 }
 0x73f   :  { %v586_v43 = vsel %vm585_vm10, %v1043_v33, %v582_v40  ;;  %v754_v20 = vmul.f32 %v1045_v41, %v749_v36  ;;  %vm759_vm12 = vweird.f32 %v1045_v41 }
 0x740   :  { %v591_v44 = vsel %vm588_vm11, %v590_v42, %v586_v43  ;;  %vm760_vm14 = vmor %vm758_vm13, %vm759_vm12 }
 0x741   :  { %v755_v45 = vsub.f32 1.0, %v754_v20  ;;  %v594_v46 = vmul.f32 %v1037_v22, %v591_v44 }
 0x743   :  { %v756_v48 = vmul.f32 %v1045_v41, %v755_v45  ;;  %983 = vmatmul.msk.f32.vlgmr.msrb.gmra.mxu1 %vm117_vm1, %v594_v46 }
 0x745   :  { %v757_v50 = vadd.f32 %v1045_v41, %v756_v48 }
 0x747   :  { %v761_v52 = vsel %vm760_vm14, %v1045_v41, %v757_v50 }
 0x748   :  { %v766_v53 = vsel %vm763_vm15, %v765_v51, %v761_v52  ;;  %v1014_v52 = vld [vmem:[%s1359_s5] ss:$0 sm:$0xff]  ;;  %s1173_s5 = smov [#allocation8]  }
 0x749   :  { %v783_v54 = vmul.f32 %v1039_v25, %v766_v53 }
 0x74a   :  { %v786_v55 = vpop.permute.xlu0 %785 }
 0x74b   :  { %806 = vmatpush.msra.mxu1 %v786_v55  ;;  %v1015_v55 = vld [vmem:[%s1360_s6] ss:$0 sm:$0xff]  ;;  %s944_s6 = sshll.u32 %s1173_s5, 4  ;;  %s945_s6 = int_to_ptr.vmem [resolvable:$true] %s944_s6 }
 0x74c   :  { %990 = vmatmul.msk.f32.vlgmr.msra.gmra.mxu1 %vm117_vm1, %v783_v54 }
 0x780   :  { %v752_v56 = vpop.xlane.xlu1 %751 }
 0x781   :  { %1046 = vrcp.f32 %v752_v56  ;;  %v779_v62 = vand.u32 2147483648, %v752_v56  ;;  %vm773_vm3 = vweird.f32 %v752_v56  ;;  %v777_v63 = vand.u32 2147483647, %v752_v56 }
 0x782   :  { %1048 = vrcp.f32 %v1172_v29 }
 0x783   :  { %v780_v1 = vor.u32 1.1754944e-38, %v779_v62  ;;  %vm778_vm5 = vcmp.eq.f32.partialorder %v777_v63, 8.507059e+37 }
 0x787   :  { %v1047_v57 = vpop.eup %1046 }
 0x788   :  { %v769_v58 = vmul.f32 %v1047_v57, %v752_v56  ;;  %vm774_vm2 = vweird.f32 %v1047_v57 }
 0x789   :  { %vm775_vm4 = vmor %vm773_vm3, %vm774_vm2 }
 0x78a   :  { %v770_v59 = vsub.f32 1.0, %v769_v58 }
 0x78c   :  { %v771_v60 = vmul.f32 %v1047_v57, %v770_v59 }
 0x78e   :  { %v772_v61 = vadd.f32 %v1047_v57, %v771_v60 }
 0x790   :  { %v776_v0 = vsel %vm775_vm4, %v1047_v57, %v772_v61 }
 0x791   :  { %v781_v2 = vsel %vm778_vm5, %v780_v1, %v776_v0 }
 0x792   :  { %v784_v5 = vmul.f32 %v1041_v30, %v781_v2  ;;  %v1049_v30 = vpop.eup %1048 }
 0x793   :  { %v882_v31 = vmul.f32 32.0, %v1049_v30 }
 0x795   :  { %v883_v32 = vsub.f32 1.0, %v882_v31 }
 0x797   :  { %v884_v33 = vmul.f32 %v1049_v30, %v883_v32 }
 0x798   :  { %v812_v3 = vpop.permute.xlu1 %811 }
 0x799   :  { %832 = vmatpush.msrb.mxu0 %v812_v3  ;;  %v885_v34 = vadd.f32 %v1049_v30, %v884_v33 }
 0x79a   :  { %991 = vmatmul.msk.f32.vlgmr.msrb.gmra.mxu0 %vm117_vm1, %v784_v5 }
 0x7c0   :  { %v644_v9 = vpop.f32.mrf.mxu1 }
 0x7c1   :  { %985 = vmatmul.msk.f32.gmra.mxu2 %vm117_vm1, %v644_v9 }
 0x7c9   :  { %v808_v10 = vpop.f32.mrf.mxu1 }
 0x7ca   :  { %992 = vmatmul.msk.f32.vlgmr.msrb.gmra.mxu3 %vm117_vm1, %v808_v10 }
 0x817   :  { %v834_v11 = vpop.f32.mrf.mxu0 }
 0x818   :  { %993 = vmatmul.msk.f32.gmra.mxu3 %vm117_vm1, %v834_v11  ;;  %vm886_vm1 = vweird.f32 %v1049_v30 }
 0x819   :  { %v887_v35 = vsel %vm886_vm1, %v1049_v30, %v885_v34 }
 0x844   :  { %v674_v23 = vpop.f32.mrf.mxu2 }
 0x845   :  { %v678_v25 = vadd.f32 %v674_v23, %v487_v24 }
 0x84d   :  { %v861_v18 = vpop.f32.mrf.mxu3 }
 0x84e   :  { %v867_v19 = vadd.f32 %v861_v18, %v677_v16 }
 0x850   :  { %v873_v21 = vadd.f32 %v1013_v17, %v867_v19 }
 0x852   :  { %v875_v22 = vsel %vm84_vm0, %v873_v21, 0.0 }
 0x853   :  { %876 = vadd.xlane.f32.xlu0 %v875_v22 }
 0x89b   :  { %v864_v26 = vpop.f32.mrf.mxu3 }
 0x89c   :  { %v868_v27 = vadd.f32 %v864_v26, %v678_v25 }
 0x89e   :  { %v874_v28 = vadd.f32 %v1013_v17, %v868_v27 }
 0x8a0   :  { %v878_v4 = vsel %vm84_vm0, %v874_v28, 0.0 }
 0x8a1   :  { %879 = vadd.xlane.f32.xlu2 %v878_v4 }
 0x8c6   :  { %v877_v36 = vpop.xlane.xlu0 %876 }
 0x8c7   :  { %v888_v37 = vmul.f32 %v887_v35, %v877_v36 }
 0x8c9   :  { %v890_v7 = vsub.f32 %v873_v21, %v888_v37 }
 0x8cb   :  { %v892_v6 = vmul.f32 %v890_v7, %v890_v7 }
 0x8cd   :  { %v894_v38 = vsel %vm84_vm0, %v892_v6, 0.0 }
 0x8ce   :  { %895 = vadd.xlane.f32.xlu1 %v894_v38 }
 0x914   :  { %v880_v39 = vpop.xlane.xlu2 %879 }
 0x915   :  { %v889_v40 = vmul.f32 %v887_v35, %v880_v39 }
 0x917   :  { %v891_v41 = vsub.f32 %v874_v28, %v889_v40 }
 0x919   :  { %v893_v42 = vmul.f32 %v891_v41, %v891_v41 }
 0x91b   :  { %v897_v43 = vsel %vm84_vm0, %v893_v42, 0.0 }
 0x91c   :  { %898 = vadd.xlane.f32.xlu0 %v897_v43 }
 0x941   :  { %v896_v20 = vpop.xlane.xlu1 %895 }
 0x942   :  { %v900_v44 = vmul.f32 %v896_v20, %v887_v35 }
 0x944   :  { %v902_v45 = vadd.f32 1e-05, %v900_v44 }
 0x946   :  { %1050 = vrsqrt.f32 %v902_v45  ;;  %vm910_vm7 = vweird.f32 %v902_v45 }
 0x94c   :  { %v1051_v46 = vpop.eup %1050 }
 0x94d   :  { %v905_v47 = vmul.f32 %v1051_v46, %v902_v45  ;;  %vm911_vm6 = vweird.f32 %v1051_v46 }
 0x94e   :  { %vm912_vm8 = vmor %vm910_vm7, %vm911_vm6 }
 0x94f   :  { %v906_v48 = vmul.f32 %v1051_v46, %v905_v47 }
 0x951   :  { %v907_v49 = vmul.f32 0.5, %v906_v48 }
 0x953   :  { %v908_v50 = vsub.f32 1.5, %v907_v49 }
 0x955   :  { %v909_v51 = vmul.f32 %v1051_v46, %v908_v50 }
 0x957   :  { %v913_v53 = vsel %vm912_vm8, %v1051_v46, %v909_v51 }
 0x958   :  { %v924_v54 = vmul.f32 %v913_v53, %v890_v7 }
 0x95a   :  { %v930_v56 = vmul.f32 %v1014_v52, %v924_v54 }
 0x95c   :  { %v936_v57 = vadd.f32 %v1015_v55, %v930_v56 }
 0x95e   :  { %938 = vst.msk [vmem:[#allocation8] sm:$0xff] %vm84_vm0, %v936_v57 }
 0x98f   :  { %v899_v58 = vpop.xlane.xlu0 %898 }
 0x990   :  { %v901_v59 = vmul.f32 %v899_v58, %v887_v35 }
 0x992   :  { %v903_v60 = vadd.f32 1e-05, %v901_v59 }
 0x994   :  { %1052 = vrsqrt.f32 %v903_v60  ;;  %vm920_vm10 = vweird.f32 %v903_v60 }
 0x99a   :  { %v1053_v61 = vpop.eup %1052 }
 0x99b   :  { %v915_v62 = vmul.f32 %v1053_v61, %v903_v60  ;;  %vm921_vm9 = vweird.f32 %v1053_v61 }
 0x99c   :  { %vm922_vm11 = vmor %vm920_vm10, %vm921_vm9 }
 0x99d   :  { %v916_v63 = vmul.f32 %v1053_v61, %v915_v62 }
 0x99f   :  { %v917_v0 = vmul.f32 0.5, %v916_v63 }
 0x9a1   :  { %v918_v1 = vsub.f32 1.5, %v917_v0 }
 0x9a3   :  { %v919_v2 = vmul.f32 %v1053_v61, %v918_v1 }
 0x9a5   :  { %v923_v3 = vsel %vm922_vm11, %v1053_v61, %v919_v2 }
 0x9a6   :  { %v925_v5 = vmul.f32 %v923_v3, %v891_v41 }
 0x9a8   :  { %v931_v8 = vmul.f32 %v1014_v52, %v925_v5 }
 0x9aa   :  { %v937_v9 = vadd.f32 %v1015_v55, %v931_v8 }
 0x9ac   :  { %939 = vst.msk [vmem:[#allocation8 + $0x8] sm:$0xff] %vm84_vm0, %v937_v9 }
 0x9ad   :  { %952 = dma.vmem_to_hbm [thread:$0]  %s945_s6, 256, %s947_s13, [#allocation4], %s1157_s9, %s1157_s9, %s1158_s10  }
 0x9ae   :  { %1154 = dma.done.wait [#allocation4], 256  }
 0x9af   :  { %1155 = vsyncadd [#allocation4], 4294967040 }
 0x9b0   :  { %957 = vsyncpa [#allocation3], 1 }
 0x9b1   :  { %958 = vsyncpa [#allocation6], 1 }
 0x9b2   :  { %959 = vsyncpa [#allocation4], 1 }

</bundles_post_ra>
